<compile_context>
chip_gen: v6e
topology: v6e:2x2x1
jax: 0.10.0
libtpu: 0.0.40
codegen_flags: <defaults>
</compile_context>

<pallas_src>
import functools

import jax
import jax.numpy as jnp
from jax.experimental import pallas as pl
from jax.experimental.pallas import tpu as pltpu


def _round_up(n, m):
    return ((n + m - 1) // m) * m


def _mlp_proposal_kernel(x_ref, w1_ref, b1_ref, w2_ref, b2_ref,
                         wh_ref, bh_ref, s_ref, out_ref,
                         *, d_out, log_flag, relu_flag, resnet):
    """One batch tile of the MlpProposal forward pass, fully in VMEM."""
    act = (lambda v: jnp.maximum(v, 0.0)) if relu_flag else jnp.tanh

    x = x_ref[...]                                            # [TB, d_in] bf16

    # input_to_hidden: Linear -> act -> Linear -> act  (n_layers = 2)
    h = jnp.dot(x, w1_ref[...], preferred_element_type=jnp.float32) + b1_ref[...]
    h = act(h)
    h = jnp.dot(h.astype(jnp.bfloat16), w2_ref[...],
                preferred_element_type=jnp.float32) + b2_ref[...]
    h = act(h)

    # Fused heads: cols [0, d_out) = hidden_to_mean, [d_out, 2*d_out) = hidden_to_tau.
    y = jnp.dot(h.astype(jnp.bfloat16), wh_ref[...],
                preferred_element_type=jnp.float32) + bh_ref[...]   # [TB, HP] f32

    if resnet:
        # Scatter x[:, :d_out] into cols [0, d_out) of the padded slab via a 0/1
        # selection matrix (exact: bf16(x) * 1.0 accumulated in f32).
        skip = jnp.dot(x, s_ref[...], preferred_element_type=jnp.float32)
        mean_vals = y + skip
    else:
        mean_vals = y

    var_vals = jnp.exp(jnp.minimum(y, 10.0))
    if log_flag:
        var_vals = jnp.log(1.0 + var_vals)

    col = jax.lax.broadcasted_iota(jnp.int32, y.shape, 1)
    out_ref[...] = jnp.where(col < d_out, mean_vals, var_vals)


def _pack_params(params, d_in, d_hidden, d_out):
    """Pad feature dims to 128 lanes, fuse the mean/tau heads, cast weights to bf16."""
    dh_p = _round_up(d_hidden, 128)
    hp = _round_up(2 * d_out, 128)
    f32, bf16 = jnp.float32, jnp.bfloat16

    w1 = jnp.zeros((d_in, dh_p), f32).at[:, :d_hidden].set(params["w1"])
    b1 = jnp.zeros((1, dh_p), f32).at[:, :d_hidden].set(params["b1"])
    w2 = jnp.zeros((dh_p, dh_p), f32).at[:d_hidden, :d_hidden].set(params["w2"])
    b2 = jnp.zeros((1, dh_p), f32).at[:, :d_hidden].set(params["b2"])

    wh = (jnp.zeros((dh_p, hp), f32)
          .at[:d_hidden, :d_out].set(params["wm"])
          .at[:d_hidden, d_out:2 * d_out].set(params["wt"]))
    bh = (jnp.zeros((1, hp), f32)
          .at[:, :d_out].set(params["bm"])
          .at[:, d_out:2 * d_out].set(params["bt"]))

    # Selection matrix for the resnet skip: S[j, j] = 1 for j < d_out.
    s = jnp.zeros((d_in, hp), f32).at[:d_out, :d_out].set(jnp.eye(d_out, dtype=f32))

    packed = dict(w1=w1.astype(bf16), b1=b1,
                  w2=w2.astype(bf16), b2=b2,
                  wh=wh.astype(bf16), bh=bh,
                  s=s.astype(bf16))
    return packed, dh_p, hp


def mlp_proposal_forward(x, params, *, d_out, log_flag=True, relu_flag=True,
                         resnet=True, block_batch=256):
    batch, d_in = x.shape
    d_hidden = params["w1"].shape[1]
    if resnet and d_in < d_out:
        raise ValueError("resnet skip x[:, :d_out] requires d_in >= d_out")

    packed, dh_p, hp = _pack_params(params, d_in, d_hidden, d_out)

    # Batch tiling: stream x / output tiles while the weights stay resident.
    tb = min(block_batch, _round_up(batch, 8))
    batch_p = _round_up(batch, tb)

    x_b = x.astype(jnp.bfloat16)
    if batch_p != batch:
        x_b = jnp.zeros((batch_p, d_in), jnp.bfloat16).at[:batch].set(x_b)

    grid = (batch_p // tb,)

    kernel = functools.partial(_mlp_proposal_kernel, d_out=d_out,
                               log_flag=log_flag, relu_flag=relu_flag,
                               resnet=resnet)

    in_specs = [
        pl.BlockSpec((tb, d_in), lambda i: (i, 0)),      # x      (streamed)
        pl.BlockSpec((d_in, dh_p), lambda i: (0, 0)),    # w1     (resident)
        pl.BlockSpec((1, dh_p), lambda i: (0, 0)),       # b1
        pl.BlockSpec((dh_p, dh_p), lambda i: (0, 0)),    # w2
        pl.BlockSpec((1, dh_p), lambda i: (0, 0)),       # b2
        pl.BlockSpec((dh_p, hp), lambda i: (0, 0)),      # fused mean|tau weights
        pl.BlockSpec((1, hp), lambda i: (0, 0)),         # fused mean|tau bias
        pl.BlockSpec((d_in, hp), lambda i: (0, 0)),      # resnet selection matrix
    ]
    out_specs = pl.BlockSpec((tb, hp), lambda i: (i, 0))  # lane-dense output slab

    def _nbytes(a):
        return a.size * a.dtype.itemsize

    param_bytes = sum(_nbytes(v) for v in packed.values())
    io_tile_bytes = tb * d_in * 2 + tb * hp * 4            # x tile + out tile
    vmem_limit = int(min(max(2 * (param_bytes + io_tile_bytes) + (8 << 20),
                             32 << 20), 60 << 20))

    flops = 2 * batch_p * (d_in * dh_p + dh_p * dh_p + dh_p * hp
                           + (d_in * hp if resnet else 0))
    transcendentals = batch_p * hp * (1 + (1 if log_flag else 0)) \
        + (0 if relu_flag else 2 * batch_p * dh_p)
    bytes_accessed = _nbytes(x_b) + param_bytes + batch_p * hp * 4

    out = pl.pallas_call(
        kernel,
        grid=grid,
        in_specs=in_specs,
        out_specs=out_specs,
        out_shape=jax.ShapeDtypeStruct((batch_p, hp), jnp.float32),
        compiler_params=pltpu.CompilerParams(
            dimension_semantics=("parallel",),
            vmem_limit_bytes=vmem_limit),
        cost_estimate=pl.CostEstimate(flops=flops,
                                      transcendentals=transcendentals,
                                      bytes_accessed=bytes_accessed),
    )(x_b, packed["w1"], packed["b1"], packed["w2"], packed["b2"],
      packed["wh"], packed["bh"], packed["s"])

    mean = out[:batch, :d_out]
    var = out[:batch, d_out:2 * d_out]
    return mean, var


def init_params(key, d_in, d_hidden, d_out):
    """Deterministic synthetic init (PyTorch-Linear-like uniform fan-in).
    Weights stored pre-transposed [fan_in, fan_out]; biases as [1, fan_out]."""
    keys = jax.random.split(key, 8)

    def lin(kw, kb, fan_in, fan_out):
        bound = 1.0 / jnp.sqrt(jnp.float32(fan_in))
        w = jax.random.uniform(kw, (fan_in, fan_out), jnp.float32, -bound, bound)
        b = jax.random.uniform(kb, (1, fan_out), jnp.float32, -bound, bound)
        return w, b

    w1, b1 = lin(keys[0], keys[1], d_in, d_hidden)
    w2, b2 = lin(keys[2], keys[3], d_hidden, d_hidden)
    wm, bm = lin(keys[4], keys[5], d_hidden, d_out)
    wt, bt = lin(keys[6], keys[7], d_hidden, d_out)
    return dict(w1=w1, b1=b1, w2=w2, b2=b2, wm=wm, bm=bm, wt=wt, bt=bt)


def reference_forward(x, params, *, d_out, log_flag=True, relu_flag=True,
                      resnet=True):
    """Plain-JAX reference mirroring the kernel's bf16-weight / f32-accumulate math."""
    f32, bf16 = jnp.float32, jnp.bfloat16
    act = (lambda v: jnp.maximum(v, 0.0)) if relu_flag else jnp.tanh
    xb = x.astype(bf16)
    h = act(jnp.dot(xb, params["w1"].astype(bf16),
                    preferred_element_type=f32) + params["b1"])
    h = act(jnp.dot(h.astype(bf16), params["w2"].astype(bf16),
                    preferred_element_type=f32) + params["b2"])
    mean = jnp.dot(h.astype(bf16), params["wm"].astype(bf16),
                   preferred_element_type=f32) + params["bm"]
    tau = jnp.dot(h.astype(bf16), params["wt"].astype(bf16),
                  preferred_element_type=f32) + params["bt"]
    if resnet:
        mean = mean + xb[:, :d_out].astype(f32)
    var = jnp.exp(jnp.minimum(tau, 10.0))
    if log_flag:
        var = jnp.log(1.0 + var)
    return mean, var


if __name__ == "__main__":
    # Small shapes implied by the module: x is [batch, d_in], d_in >= d_out
    # (needed for the resnet skip x[:, :d_out]).
    batch, d_in, d_hidden, d_out = 8, 8, 32, 4

    key = jax.random.PRNGKey(0)
    k_x, k_p = jax.random.split(key)
    x = jax.random.normal(k_x, (batch, d_in), jnp.float32)
    params = init_params(k_p, d_in, d_hidden, d_out)

    for cfg in (dict(log_flag=True, relu_flag=True, resnet=True),
                dict(log_flag=False, relu_flag=False, resnet=False)):
        mean, var = mlp_proposal_forward(x, params, d_out=d_out, **cfg)
        jax.block_until_ready((mean, var))
        mean_ref, var_ref = reference_forward(x, params, d_out=d_out, **cfg)
        assert mean.shape == (batch, d_out) and var.shape == (batch, d_out)
        assert jnp.allclose(mean, mean_ref, atol=1e-3, rtol=1e-3), \
            f"mean mismatch {cfg}: {jnp.max(jnp.abs(mean - mean_ref))}"
        assert jnp.allclose(var, var_ref, atol=1e-3, rtol=1e-3), \
            f"var mismatch {cfg}: {jnp.max(jnp.abs(var - var_ref))}"

    print("KERNEL_OK")
</pallas_src>

<mosaic_0001>
module attributes {stable_mosaic.version = 11 : i64} {
  func.func @_mlp_proposal_kernel(%arg0: i32, %arg1: memref<8x8xbf16, #tpu.memory_space<vmem>>, %arg2: memref<8x128xbf16, #tpu.memory_space<vmem>>, %arg3: memref<1x128xf32, #tpu.memory_space<vmem>>, %arg4: memref<128x128xbf16, #tpu.memory_space<vmem>>, %arg5: memref<1x128xf32, #tpu.memory_space<vmem>>, %arg6: memref<128x128xbf16, #tpu.memory_space<vmem>>, %arg7: memref<1x128xf32, #tpu.memory_space<vmem>>, %arg8: memref<8x128xbf16, #tpu.memory_space<vmem>>, %arg9: memref<8x128xf32, #tpu.memory_space<vmem>>) attributes {dimension_semantics = [#tpu.dimension_semantics<parallel>], iteration_bounds = array<i64: 1>, scalar_prefetch = 0 : i64, scratch_operands = 0 : i64, tpu.core_type = #tpu.core_type<tc>, window_params = [{transform_indices = @transform_0, window_bounds = array<i64: 8, 8>}, {pipeline_mode = #tpu.pipeline_mode<synchronous>, transform_indices = @transform_1, window_bounds = array<i64: 8, 128>}, {pipeline_mode = #tpu.pipeline_mode<synchronous>, transform_indices = @transform_2, window_bounds = array<i64: 1, 128>}, {pipeline_mode = #tpu.pipeline_mode<synchronous>, transform_indices = @transform_3, window_bounds = array<i64: 128, 128>}, {pipeline_mode = #tpu.pipeline_mode<synchronous>, transform_indices = @transform_4, window_bounds = array<i64: 1, 128>}, {pipeline_mode = #tpu.pipeline_mode<synchronous>, transform_indices = @transform_5, window_bounds = array<i64: 128, 128>}, {pipeline_mode = #tpu.pipeline_mode<synchronous>, transform_indices = @transform_6, window_bounds = array<i64: 1, 128>}, {pipeline_mode = #tpu.pipeline_mode<synchronous>, transform_indices = @transform_7, window_bounds = array<i64: 8, 128>}, {transform_indices = @transform_8, window_bounds = array<i64: 8, 128>}]} {
    %c0 = arith.constant 0 : index
    %c0_0 = arith.constant 0 : index
    %0 = vector.load %arg1[%c0, %c0_0] : memref<8x8xbf16, #tpu.memory_space<vmem>>, vector<8x8xbf16>
    %c0_1 = arith.constant 0 : index
    %c0_2 = arith.constant 0 : index
    %1 = vector.load %arg2[%c0_1, %c0_2] : memref<8x128xbf16, #tpu.memory_space<vmem>>, vector<8x128xbf16>
    %cst = arith.constant dense<0.000000e+00> : vector<8x128xf32>
    %2 = tpu.matmul %0, %1, %cst {dimension_numbers = #tpu.dot_dimension_numbers<[1], [0], [0], [1], [0, 0, 1, 1], [], []>} : vector<8x8xbf16>, vector<8x128xbf16>, vector<8x128xf32> -> vector<8x128xf32>
    %c0_3 = arith.constant 0 : index
    %c0_4 = arith.constant 0 : index
    %3 = vector.load %arg3[%c0_3, %c0_4] : memref<1x128xf32, #tpu.memory_space<vmem>>, vector<1x128xf32>
    %4 = vector.broadcast %3 : vector<1x128xf32> to vector<8x128xf32>
    %5 = arith.addf %2, %4 : vector<8x128xf32>
    %cst_5 = arith.constant 0.000000e+00 : f32
    %6 = vector.broadcast %cst_5 : f32 to vector<8x128xf32>
    %7 = arith.maximumf %5, %6 : vector<8x128xf32>
    %8 = arith.truncf %7 : vector<8x128xf32> to vector<8x128xbf16>
    %c0_6 = arith.constant 0 : index
    %c0_7 = arith.constant 0 : index
    %9 = vector.load %arg4[%c0_6, %c0_7] : memref<128x128xbf16, #tpu.memory_space<vmem>>, vector<128x128xbf16>
    %cst_8 = arith.constant dense<0.000000e+00> : vector<8x128xf32>
    %10 = tpu.matmul %8, %9, %cst_8 {dimension_numbers = #tpu.dot_dimension_numbers<[1], [0], [0], [1], [0, 0, 1, 1], [], []>} : vector<8x128xbf16>, vector<128x128xbf16>, vector<8x128xf32> -> vector<8x128xf32>
    %c0_9 = arith.constant 0 : index
    %c0_10 = arith.constant 0 : index
    %11 = vector.load %arg5[%c0_9, %c0_10] : memref<1x128xf32, #tpu.memory_space<vmem>>, vector<1x128xf32>
    %12 = vector.broadcast %11 : vector<1x128xf32> to vector<8x128xf32>
    %13 = arith.addf %10, %12 : vector<8x128xf32>
    %cst_11 = arith.constant 0.000000e+00 : f32
    %14 = vector.broadcast %cst_11 : f32 to vector<8x128xf32>
    %15 = arith.maximumf %13, %14 : vector<8x128xf32>
    %16 = arith.truncf %15 : vector<8x128xf32> to vector<8x128xbf16>
    %c0_12 = arith.constant 0 : index
    %c0_13 = arith.constant 0 : index
    %17 = vector.load %arg6[%c0_12, %c0_13] : memref<128x128xbf16, #tpu.memory_space<vmem>>, vector<128x128xbf16>
    %cst_14 = arith.constant dense<0.000000e+00> : vector<8x128xf32>
    %18 = tpu.matmul %16, %17, %cst_14 {dimension_numbers = #tpu.dot_dimension_numbers<[1], [0], [0], [1], [0, 0, 1, 1], [], []>} : vector<8x128xbf16>, vector<128x128xbf16>, vector<8x128xf32> -> vector<8x128xf32>
    %c0_15 = arith.constant 0 : index
    %c0_16 = arith.constant 0 : index
    %19 = vector.load %arg7[%c0_15, %c0_16] : memref<1x128xf32, #tpu.memory_space<vmem>>, vector<1x128xf32>
    %20 = vector.broadcast %19 : vector<1x128xf32> to vector<8x128xf32>
    %21 = arith.addf %18, %20 : vector<8x128xf32>
    %c0_17 = arith.constant 0 : index
    %c0_18 = arith.constant 0 : index
    %22 = vector.load %arg8[%c0_17, %c0_18] : memref<8x128xbf16, #tpu.memory_space<vmem>>, vector<8x128xbf16>
    %cst_19 = arith.constant dense<0.000000e+00> : vector<8x128xf32>
    %23 = tpu.matmul %0, %22, %cst_19 {dimension_numbers = #tpu.dot_dimension_numbers<[1], [0], [0], [1], [0, 0, 1, 1], [], []>} : vector<8x8xbf16>, vector<8x128xbf16>, vector<8x128xf32> -> vector<8x128xf32>
    %24 = arith.addf %21, %23 : vector<8x128xf32>
    %cst_20 = arith.constant 1.000000e+01 : f32
    %25 = vector.broadcast %cst_20 : f32 to vector<8x128xf32>
    %26 = arith.minimumf %21, %25 : vector<8x128xf32>
    %27 = math.exp %26 : vector<8x128xf32>
    %cst_21 = arith.constant 1.000000e+00 : f32
    %28 = vector.broadcast %cst_21 : f32 to vector<8x128xf32>
    %29 = arith.addf %28, %27 : vector<8x128xf32>
    %30 = math.log %29 : vector<8x128xf32>
    %31 = tpu.iota {dimensions = array<i32: 1>} : vector<8x128xi32>
    %c4_i32 = arith.constant 4 : i32
    %32 = vector.broadcast %c4_i32 : i32 to vector<8x128xi32>
    %33 = arith.cmpi slt, %31, %32 : vector<8x128xi32>
    %34 = arith.select %33, %24, %30 : vector<8x128xi1>, vector<8x128xf32>
    %c0_22 = arith.constant 0 : index
    %c0_23 = arith.constant 0 : index
    %35 = vector.load %arg9[%c0_22, %c0_23] : memref<8x128xf32, #tpu.memory_space<vmem>>, vector<8x128xf32>
    tpu.vector_store %arg9[%c0_22, %c0_23], %34 {strides = array<i32>} : memref<8x128xf32, #tpu.memory_space<vmem>>, vector<8x128xf32>,
    return
  }
  func.func @transform_0(%arg0: i32) -> (i32, i32) {
    %c0_i32 = arith.constant 0 : i32
    %c0_i32_0 = arith.constant 0 : i32
    return %arg0, %c0_i32 : i32, i32
  }
  func.func @transform_1(%arg0: i32) -> (i32, i32) {
    %c0_i32 = arith.constant 0 : i32
    %c0_i32_0 = arith.constant 0 : i32
    %c0_i32_1 = arith.constant 0 : i32
    return %c0_i32, %c0_i32_0 : i32, i32
  }
  func.func @transform_2(%arg0: i32) -> (i32, i32) {
    %c0_i32 = arith.constant 0 : i32
    %c0_i32_0 = arith.constant 0 : i32
    %c0_i32_1 = arith.constant 0 : i32
    return %c0_i32, %c0_i32_0 : i32, i32
  }
  func.func @transform_3(%arg0: i32) -> (i32, i32) {
    %c0_i32 = arith.constant 0 : i32
    %c0_i32_0 = arith.constant 0 : i32
    %c0_i32_1 = arith.constant 0 : i32
    return %c0_i32, %c0_i32_0 : i32, i32
  }
  func.func @transform_4(%arg0: i32) -> (i32, i32) {
    %c0_i32 = arith.constant 0 : i32
    %c0_i32_0 = arith.constant 0 : i32
    %c0_i32_1 = arith.constant 0 : i32
    return %c0_i32, %c0_i32_0 : i32, i32
  }
  func.func @transform_5(%arg0: i32) -> (i32, i32) {
    %c0_i32 = arith.constant 0 : i32
    %c0_i32_0 = arith.constant 0 : i32
    %c0_i32_1 = arith.constant 0 : i32
    return %c0_i32, %c0_i32_0 : i32, i32
  }
  func.func @transform_6(%arg0: i32) -> (i32, i32) {
    %c0_i32 = arith.constant 0 : i32
    %c0_i32_0 = arith.constant 0 : i32
    %c0_i32_1 = arith.constant 0 : i32
    return %c0_i32, %c0_i32_0 : i32, i32
  }
  func.func @transform_7(%arg0: i32) -> (i32, i32) {
    %c0_i32 = arith.constant 0 : i32
    %c0_i32_0 = arith.constant 0 : i32
    %c0_i32_1 = arith.constant 0 : i32
    return %c0_i32, %c0_i32_0 : i32, i32
  }
  func.func @transform_8(%arg0: i32) -> (i32, i32) {
    %c0_i32 = arith.constant 0 : i32
    %c0_i32_0 = arith.constant 0 : i32
    return %arg0, %c0_i32 : i32, i32
  }
}

</mosaic_0001>

<bundles_post_ra>
// kernel: tpu_custom_call.1
= control target key start
LH: loop header
LB: loop body
LE: loop exit
PB: predicated region body
PF: predicated region fallthrough
CT: control target
= control target key end

     0   :  { %13 = vsyncpa [#allocation3], 0  ;;  %s781_s0 = inlined_call_operand.hbm [shape: bf16[8,8], index: 0, kind: input, shape index: {}]   ;;  %s782_s1 = inlined_call_operand.hbm [shape: bf16[8,128], index: 1, kind: input, shape index: {}]   ;;  %s783_s2 = inlined_call_operand.vmem [shape: f32[1,128], index: 2, kind: input, shape index: {}]   ;;  %s784_s3 = inlined_call_operand.hbm [shape: bf16[128,128], index: 3, kind: input, shape index: {}]   ;;  %s785_s4 = inlined_call_operand.vmem [shape: f32[1,128], index: 4, kind: input, shape index: {}]   ;;  %s786_s5 = inlined_call_operand.hbm [shape: bf16[128,128], index: 5, kind: input, shape index: {}]   ;;  %s787_s6 = inlined_call_operand.vmem [shape: f32[1,128], index: 6, kind: input, shape index: {}]   ;;  %s788_s7 = inlined_call_operand.vmem [shape: bf16[8,128], index: 7, kind: input, shape index: {}]   ;;  %s789_s8 = inlined_call_operand.hbm [shape: f32[8,128], index: 8, kind: output, shape index: {}]  }
   0x1   :  { %14 = vsyncpa [#allocation6], 0 }
   0x2   :  { %15 = vsyncpa [#allocation9], 0 }
   0x3   :  { %16 = vsyncpa [#allocation4], 0  ;;  %s670_s27 = smov [#allocation5]   ;;  %s671_s29 = smov [#allocation2]  }
   0x4   :  { %s33_s28 = sshll.u32 %s670_s27, 4  ;;  %s23_s30 = sshll.u32 %s671_s29, 4  ;;  %s34_s28 = int_to_ptr.vmem [resolvable:$true] %s33_s28  ;;  %s24_s30 = int_to_ptr.vmem [resolvable:$true] %s23_s30 }
   0x5   :  { %s570_s9 = scalar_lea.vmem %s34_s28, 64  ;;  %p575_p1 = scmp.lt.s32.totalorder %s34_s28, %s34_s28 }
   0x6   :  { %p571_p0 = scmp.ne.s32.totalorder %s34_s28, %s570_s9  ;;  %p576_p2 = scmp.lt.s32.totalorder %s570_s9, %s570_s9 }
   0x8   :  { %p577_p3 = por %p576_p2, %p575_p1 }
   0xa   :  { %p578_p4 = pnand %p577_p3, %p571_p0 }
   0xc   :  { %581 = shalt.err (!%p578_p4)
}
   0xd   :  { %36 = dma.hbm_to_vmem [thread:$0]  %s782_s1, 64, %s34_s28, [#allocation6]  }
   0xe   :  { %s590_s12 = scalar_lea.vmem %s24_s30, 64  ;;  %p595_p6 = scmp.lt.s32.totalorder %s24_s30, %s24_s30 }
   0xf   :  { %p591_p5 = scmp.ne.s32.totalorder %s24_s30, %s590_s12  ;;  %p596_p7 = scmp.lt.s32.totalorder %s590_s12, %s590_s12 }
  0x11   :  { %p597_p8 = por %p596_p7, %p595_p6 }
  0x13   :  { %p598_p9 = pnand %p597_p8, %p591_p5 }
  0x15   :  { %601 = shalt.err (!%p598_p9)
}
  0x16   :  { %26 = dma.hbm_to_vmem [thread:$0]  %s781_s0, 64, %s24_s30, [#allocation3]  }
  0x17   :  { %s672_s15 = smov [#allocation7]  }
  0x18   :  { %s44_s16 = sshll.u32 %s672_s15, 4  ;;  %s45_s16 = int_to_ptr.vmem [resolvable:$true] %s44_s16 }
  0x19   :  { %s610_s17 = scalar_lea.vmem %s45_s16, 1024  ;;  %p615_p11 = scmp.lt.s32.totalorder %s45_s16, %s45_s16 }
  0x1a   :  { %p611_p10 = scmp.ne.s32.totalorder %s45_s16, %s610_s17  ;;  %p616_p12 = scmp.lt.s32.totalorder %s610_s17, %s610_s17 }
  0x1c   :  { %p617_p13 = por %p616_p12, %p615_p11 }
  0x1e   :  { %p618_p0 = pnand %p617_p13, %p611_p10 }
  0x20   :  { %621 = shalt.err (!%p618_p0)
}
  0x21   :  { %s673_s1 = smov 64   ;;  %s674_s18 = smov 4  }
  0x22   :  { %50 = dma.hbm_to_vmem [thread:$0]  %s784_s3, 1024, %s45_s16, [#allocation6], %s673_s1, %s673_s1, %s674_s18  }
  0x23   :  { %s675_s21 = smov [#allocation8]  }
  0x24   :  { %s58_s22 = sshll.u32 %s675_s21, 4  ;;  %s59_s22 = int_to_ptr.vmem [resolvable:$true] %s58_s22 }
  0x25   :  { %s630_s0 = scalar_lea.vmem %s59_s22, 1024  ;;  %p635_p2 = scmp.lt.s32.totalorder %s59_s22, %s59_s22 }
  0x26   :  { %p631_p1 = scmp.ne.s32.totalorder %s59_s22, %s630_s0  ;;  %p636_p3 = scmp.lt.s32.totalorder %s630_s0, %s630_s0 }
  0x28   :  { %p637_p4 = por %p636_p3, %p635_p2 }
  0x2a   :  { %p638_p5 = pnand %p637_p4, %p631_p1 }
  0x2c   :  { %641 = shalt.err (!%p638_p5)
}
  0x2d   :  { %64 = dma.hbm_to_vmem [thread:$0]  %s786_s5, 1024, %s59_s22, [#allocation9], %s673_s1, %s673_s1, %s674_s18  }
  0x2e   :  { %662 = dma.done.wait [#allocation3], 64  }
  0x2f   :  { %663 = vsyncadd [#allocation3], 4294967232 }
  0x30   :  { %664 = dma.done.wait [#allocation6], 1088  }
  0x31   :  { %665 = vsyncadd [#allocation6], 4294966208 }
  0x32   :  { %666 = dma.done.wait [#allocation9], 1024  }
  0x33   :  { %667 = vsyncadd [#allocation9], 4294966272  ;;  %v676_v0 = vmov 0.0   ;;  %vm677_vm0 = vmmov 0   ;;  %vm95_vm1 = vcmask 1043456   ;;  %vm91_vm2 = vcmask 64512  }
  0x34   :  { %481 = vmatprep.subr.bf16.mxu0 %v676_v0  ;;  %483 = vmatprep.mubr.msk.bf16.mxu0 %vm677_vm0, %v676_v0  ;;  %v83_v1 = vld [vmem:[#allocation5] sm:$0xf]  ;;  %v82_v2 = vld [vmem:[#allocation2] sm:$0xf]  ;;  %v543_v5 = vld [vmem:[#allocation7 + $0x30] sm:$0xff]   ;;  %v416_v52 = vlaneseq }
  0x35   :  { %487 = vmatprep.subr.bf16.mxu1 %v676_v0  ;;  %503 = vmatprep.mubr.msk.bf16.mxu1 %vm677_vm0, %v676_v0  ;;  %v97_v3 = vsel %vm95_vm1, %v83_v1, 0  ;;  %v542_v4 = vld [vmem:[#allocation7 + $0x38] sm:$0xff]   ;;  %v544_v6 = vld [vmem:[#allocation7 + $0x28] sm:$0xff]   ;;  %v545_v7 = vld [vmem:[#allocation7 + $0x20] sm:$0xff]  }
  0x36   :  { %482 = vmatpush3.bf16.msra.mxu0 %v97_v3  ;;  %488 = vmatpush3.bf16.msra.mxu1 %v542_v4  ;;  %v546_v8 = vld [vmem:[#allocation7 + $0x18] sm:$0xff]   ;;  %v547_v9 = vld [vmem:[#allocation7 + $0x10] sm:$0xff]   ;;  %v548_v10 = vld [vmem:[#allocation7 + $0x8] sm:$0xff]   ;;  %v417_v53 = vand.u32 127, %v416_v52 }
  0x37   :  { %507 = vmatprep.subr.bf16.mxu0 %v676_v0  ;;  %489 = vmatprep.subr.bf16.mxu1 %v676_v0  ;;  %v549_v11 = vld [vmem:[#allocation7] sm:$0xff]   ;;  %v550_v12 = vld [vmem:[#allocation8 + $0x38] sm:$0xff]   ;;  %v551_v13 = vld [vmem:[#allocation8 + $0x30] sm:$0xff]  }
  0x38   :  { %v552_v14 = vld [vmem:[#allocation8 + $0x28] sm:$0xff]   ;;  %v553_v15 = vld [vmem:[#allocation8 + $0x20] sm:$0xff]   ;;  %v554_v16 = vld [vmem:[#allocation8 + $0x18] sm:$0xff]   ;;  %vm418_vm3 = vcmp.lt.s32.totalorder %v417_v53, 4 }
  0x39   :  { %484 = vmatmul.mubr.msk.bf16.vlgmr.msra.gmra.mxu0 %vm91_vm2, %v82_v2  ;;  %v555_v17 = vld [vmem:[#allocation8 + $0x10] sm:$0xff]   ;;  %v438_v18 = vld [vmem:[%s783_s2] ss:$0 sm:$0xff]  ;;  %v556_v28 = vld [vmem:[#allocation8 + $0x8] sm:$0xff]  }
  0x3a   :  { %523 = vmatprep.mubr.msk.bf16.mxu0 %vm677_vm0, %v676_v0  ;;  %490 = vmatpush3.bf16.msra.mxu1 %v543_v5  ;;  %v365_v21 = vld [vmem:[%s788_s7] sm:$0xf]  ;;  %v557_v29 = vld [vmem:[#allocation8] sm:$0xff]  }
  0x3b   :  { %491 = vmatprep.subr.bf16.mxu1 %v676_v0  ;;  %508 = vmatpush3.bf16.msra.mxu0 %v550_v12  ;;  %v367_v25 = vsel %vm95_vm1, %v365_v21, 0  ;;  %v440_v30 = vld [vmem:[%s785_s4] ss:$0 sm:$0xff]  ;;  %s678_s4 = smov [#allocation10]  }
  0x3c   :  { %509 = vmatprep.subr.bf16.mxu0 %v676_v0  ;;  %v449_v42 = vld [vmem:[%s787_s6] ss:$0 sm:$0xff]  ;;  %s427_s29 = sshll.u32 %s678_s4, 4  ;;  %s428_s29 = int_to_ptr.vmem [resolvable:$true] %s427_s29 }
  0x3d   :  { %s642_s6 = scalar_lea.vmem %s428_s29, 128  ;;  %p647_p7 = scmp.lt.s32.totalorder %s428_s29, %s428_s29 }
  0x3e   :  { %492 = vmatpush3.bf16.msra.mxu1 %v544_v6  ;;  %p643_p6 = scmp.ne.s32.totalorder %s428_s29, %s642_s6  ;;  %p648_p8 = scmp.lt.s32.totalorder %s642_s6, %s642_s6 }
  0x3f   :  { %493 = vmatprep.subr.bf16.mxu1 %v676_v0  ;;  %510 = vmatpush3.bf16.msra.mxu0 %v551_v13 }
  0x40   :  { %511 = vmatprep.subr.bf16.mxu0 %v676_v0  ;;  %p649_p9 = por %p648_p8, %p647_p7 }
  0x42   :  { %494 = vmatpush3.bf16.msra.mxu1 %v545_v7  ;;  %p650_p10 = pnand %p649_p9, %p643_p6 }
  0x43   :  { %495 = vmatprep.subr.bf16.mxu1 %v676_v0  ;;  %512 = vmatpush3.bf16.msra.mxu0 %v552_v14 }
  0x44   :  { %513 = vmatprep.subr.bf16.mxu0 %v676_v0 }
  0x46   :  { %496 = vmatpush3.bf16.msra.mxu1 %v546_v8 }
  0x47   :  { %497 = vmatprep.subr.bf16.mxu1 %v676_v0  ;;  %514 = vmatpush3.bf16.msra.mxu0 %v553_v15 }
  0x48   :  { %515 = vmatprep.subr.bf16.mxu0 %v676_v0 }
  0x4a   :  { %498 = vmatpush3.bf16.msra.mxu1 %v547_v9 }
  0x4b   :  { %499 = vmatprep.subr.bf16.mxu1 %v676_v0  ;;  %516 = vmatpush3.bf16.msra.mxu0 %v554_v16 }
  0x4c   :  { %517 = vmatprep.subr.bf16.mxu0 %v676_v0 }
  0x4e   :  { %500 = vmatpush3.bf16.msra.mxu1 %v548_v10 }
  0x4f   :  { %501 = vmatprep.subr.bf16.mxu1 %v676_v0  ;;  %518 = vmatpush3.bf16.msra.mxu0 %v555_v17 }
  0x50   :  { %519 = vmatprep.subr.bf16.mxu0 %v676_v0 }
  0x52   :  { %502 = vmatpush3.bf16.msra.mxu1 %v549_v11 }
  0x53   :  { %527 = vmatprep.subr.bf16.mxu1 %v676_v0  ;;  %520 = vmatpush3.bf16.msra.mxu0 %v556_v28 }
  0x54   :  { %521 = vmatprep.subr.bf16.mxu0 %v676_v0 }
  0x57   :  { %522 = vmatpush3.bf16.msra.mxu0 %v557_v29 }
  0xf9   :  { %v133_v19 = vpop.f32.mrf.mxu0 }
  0xfa   :  { %v134_v20 = vadd.f32 %v438_v18, %v133_v19 }
  0xfb   :  { %v485_v22 = vpop.f32.mrf.mxu0 }
  0xfc   :  { %v139_v23 = vmax.f32 %v134_v20, 0.0 }
  0xfd   :  { %v136_v24 = vpop.f32.mrf.mxu0 }
  0xfe   :  { %v140_v26 = vpack.c.bf16 %v139_v23, %v139_v23 }
  0xff   :  { %v486_v27 = vpop.f32.mrf.mxu0 }
 0x100   :  { %504 = vmatmul.mubr.bf16.vlgmr.msra.gmra.mxu1 %v140_v26 }
 0x101   :  { %528 = vmatpush3.bf16.msra.mxu1 %v367_v25  ;;  %529 = vmatprep.mubr.msk.bf16.mxu1 %vm677_vm0, %v676_v0 }
 0x108   :  { %530 = vmatmul.mubr.msk.bf16.vlgmr.msra.gmra.mxu1 %vm91_vm2, %v82_v2 }
 0x1c0   :  { %v246_v31 = vpop.f32.mrf.mxu1 }
 0x1c1   :  { %v247_v32 = vadd.f32 %v440_v30, %v246_v31 }
 0x1c2   :  { %v505_v33 = vpop.f32.mrf.mxu1 }
 0x1c3   :  { %v252_v34 = vmax.f32 %v247_v32, 0.0 }
 0x1c4   :  { %v249_v35 = vpop.f32.mrf.mxu1 }
 0x1c5   :  { %v253_v36 = vpack.c.bf16 %v252_v34, %v252_v34 }
 0x1c6   :  { %v506_v37 = vpop.f32.mrf.mxu1 }
 0x1c7   :  { %524 = vmatmul.mubr.bf16.vlgmr.msra.gmra.mxu0 %v253_v36 }
 0x1c8   :  { %v403_v38 = vpop.f32.mrf.mxu1 }
 0x1ca   :  { %v531_v39 = vpop.f32.mrf.mxu1 }
 0x1cc   :  { %v406_v40 = vpop.f32.mrf.mxu1 }
 0x1ce   :  { %v532_v41 = vpop.f32.mrf.mxu1 }
 0x287   :  { %v359_v43 = vpop.f32.mrf.mxu0 }
 0x288   :  { %v360_v44 = vadd.f32 %v449_v42, %v359_v43 }
 0x289   :  { %v525_v45 = vpop.f32.mrf.mxu0 }
 0x28a   :  { %v410_v46 = vmin.f32 %v360_v44, 10.0  ;;  %v409_v55 = vadd.f32 %v403_v38, %v360_v44 }
 0x28b   :  { %v362_v47 = vpop.f32.mrf.mxu0 }
 0x28c   :  { %v411_v48 = vmul.f32 1.442695, %v410_v46 }
 0x28d   :  { %v526_v49 = vpop.f32.mrf.mxu0 }
 0x28e   :  { %558 = vpow2.f32 %v411_v48 }
 0x29b   :  { %v559_v50 = vpop.eup %558 }
 0x29c   :  { %v413_v51 = vadd.f32 1.0, %v559_v50 }
 0x29e   :  { %560 = vlog2.f32 %v413_v51 }
 0x2ab   :  { %v561_v54 = vpop.eup %560 }
 0x2ac   :  { %v415_v56 = vmul.f32 0.6931472, %v561_v54 }
 0x2ae   :  { %v419_v57 = vsel %vm418_vm3, %v409_v55, %v415_v56 }
 0x2af   :  { %420 = vst [vmem:[#allocation10] sm:$0xff] %v419_v57 }
 0x2b0   :  { %653 = shalt.err (!%p650_p10)
}
 0x2b1   :  { %430 = dma.vmem_to_hbm [thread:$0]  %s428_s29, 128, %s789_s8, [#allocation4]  }
 0x2b2   :  { %668 = dma.done.wait [#allocation4], 128  }
 0x2b3   :  { %669 = vsyncadd [#allocation4], 4294967168 }
 0x2b4   :  { %434 = vsyncpa [#allocation3], 1 }
 0x2b5   :  { %435 = vsyncpa [#allocation6], 1 }
 0x2b6   :  { %436 = vsyncpa [#allocation9], 1 }
 0x2b7   :  { %437 = vsyncpa [#allocation4], 1 }

</bundles_post_ra>
